<compile_context>
chip_gen: v7x
topology: tpu7x:2x2x1
jax: 0.10.0
libtpu: 0.0.40
codegen_flags: <defaults>
</compile_context>

<pallas_src>
import jax
import jax.numpy as jnp
import numpy as np
from jax.experimental import pallas as pl
from jax.experimental.pallas import tpu as pltpu


def mlp_kernel(x_ref, w1_ref, b1_ref, w2_ref, b2_ref, o_ref):
    # fc1: x @ W1 + b1, ReLU  (bias is [1, hid_p] -> lane-aligned row broadcast)
    h = jnp.dot(x_ref[...], w1_ref[...], preferred_element_type=jnp.float32)
    h = jnp.maximum(h + b1_ref[...], 0.0)
    # fc2: h @ W2 + b2, ReLU (final ReLU is part of the reference module).
    # The cast of the f32 activations to the weight dtype is intentional:
    # a no-op for f32 weights, and the desired behaviour for a bf16 variant.
    y = jnp.dot(h.astype(w2_ref.dtype), w2_ref[...],
                preferred_element_type=jnp.float32)
    y = jnp.maximum(y + b2_ref[...], 0.0)
    o_ref[...] = y.astype(o_ref.dtype)


def _round_up(x, m):
    return ((x + m - 1) // m) * m


def pad_params(w1, b1, w2, b2, *, hid_multiple=128):
    """One-time (hoisted out of the forward path) padding of the hidden dim.

    w1: [in, hid], b1: [1, hid] or [hid], w2: [hid, out], b2: [1, out] or [out].
    Returns (w1p, b1p, w2p, b2p) with hid padded to a multiple of `hid_multiple`.
    """
    f_in, hid = w1.shape
    f_out = w2.shape[1]
    hid_p = _round_up(hid, hid_multiple)
    w1p = jnp.zeros((f_in, hid_p), w1.dtype).at[:, :hid].set(w1)
    b1p = jnp.zeros((1, hid_p), b1.dtype).at[:, :hid].set(b1.reshape(1, hid))
    w2p = jnp.zeros((hid_p, f_out), w2.dtype).at[:hid, :].set(w2)
    b2p = b2.reshape(1, f_out)
    return w1p, b1p, w2p, b2p


def mlp_forward(x, w1p, b1p, w2p, b2p, *, tn=1024, num_row_shards=2):
    """x: [N, in].  w1p/b1p/w2p/b2p: pre-padded params from pad_params().

    Computes relu(relu(x @ W1 + b1) @ W2 + b2) with a single fused kernel.
    """
    n, f_in = x.shape
    f_in_w, hid_p = w1p.shape
    f_out = w2p.shape[1]
    assert f_in_w == f_in
    assert w2p.shape == (hid_p, f_out)
    assert b1p.shape == (1, hid_p) and b2p.shape == (1, f_out)

    # Row tile: multiple of 8 sublanes.  Cap so that (a) it never exceeds the
    # (rounded-up) row count and (b) the grid has >= num_row_shards steps when
    # possible, so v7x's 2 TensorCores both get work on the "parallel" axis.
    tn_cap = max(8, _round_up(pl.cdiv(n, num_row_shards), 8))
    tn = max(8, min(tn, tn_cap))
    grid = (pl.cdiv(n, tn),)  # ragged last block: OOB output stores are masked

    out = pl.pallas_call(
        mlp_kernel,
        out_shape=jax.ShapeDtypeStruct((n, f_out), x.dtype),
        grid_spec=pltpu.PrefetchScalarGridSpec(
            num_scalar_prefetch=0,
            grid=grid,
            in_specs=[
                pl.BlockSpec((tn, f_in), lambda i: (i, 0)),      # x: streamed, unpadded
                pl.BlockSpec((f_in, hid_p), lambda i: (0, 0)),   # W1: VMEM-resident
                pl.BlockSpec((1, hid_p), lambda i: (0, 0)),      # b1: VMEM-resident
                pl.BlockSpec((hid_p, f_out), lambda i: (0, 0)),  # W2: VMEM-resident
                pl.BlockSpec((1, f_out), lambda i: (0, 0)),      # b2: VMEM-resident
            ],
            out_specs=pl.BlockSpec((tn, f_out), lambda i: (i, 0)),  # unpadded output
        ),
        compiler_params=pltpu.CompilerParams(
            dimension_semantics=("parallel",),   # v7x: shard row tiles across 2 TCs
            vmem_limit_bytes=32 * 1024 * 1024,
        ),
    )(x, w1p, b1p, w2p, b2p)
    return out


def init_linear_params(key, in_features, out_features, dtype=jnp.float32):
    """Deterministic init mimicking torch.nn.Linear (uniform(-1/sqrt(in), 1/sqrt(in)))."""
    kw, kb = jax.random.split(key)
    bound = 1.0 / np.sqrt(in_features)
    # Stored as [in, out] (transpose of PyTorch's [out, in]) for x @ W.
    w = jax.random.uniform(kw, (in_features, out_features), dtype, -bound, bound)
    b = jax.random.uniform(kb, (1, out_features), dtype, -bound, bound)
    return w, b


if __name__ == "__main__":
    # Small shapes consistent with the module: node feature vectors of size 32,
    # hidden size 16 (module default), output size 32 (same dims as input).
    N, INPUT_SIZE, HIDSIZE, OUTPUT_SIZE = 8, 32, 16, 32

    key = jax.random.PRNGKey(0)
    kx, k1, k2 = jax.random.split(key, 3)

    x = jax.random.normal(kx, (N, INPUT_SIZE), jnp.float32)
    w1, b1 = init_linear_params(k1, INPUT_SIZE, HIDSIZE)
    w2, b2 = init_linear_params(k2, HIDSIZE, OUTPUT_SIZE)

    # Hoisted one-time parameter padding (not in the per-call hot path).
    w1p, b1p, w2p, b2p = pad_params(w1, b1, w2, b2)
    w1p, b1p, w2p, b2p = jax.block_until_ready((w1p, b1p, w2p, b2p))

    out = mlp_forward(x, w1p, b1p, w2p, b2p)
    out = jax.block_until_ready(out)

    # Pure-JAX reference of the module's forward: relu(relu(x@W1+b1)@W2+b2).
    ref = jnp.maximum(jnp.maximum(x @ w1 + b1, 0.0) @ w2 + b2, 0.0)
    np.testing.assert_allclose(np.asarray(out), np.asarray(ref), rtol=1e-5, atol=1e-5)
    assert out.shape == (N, OUTPUT_SIZE)

    print("KERNEL_OK")
</pallas_src>

<mosaic_0001>
module attributes {stable_mosaic.version = 11 : i64} {
  func.func @mlp_kernel(%arg0: i32, %arg1: memref<8x32xf32, #tpu.memory_space<vmem>>, %arg2: memref<32x128xf32, #tpu.memory_space<vmem>>, %arg3: memref<1x128xf32, #tpu.memory_space<vmem>>, %arg4: memref<128x32xf32, #tpu.memory_space<vmem>>, %arg5: memref<1x32xf32, #tpu.memory_space<vmem>>, %arg6: memref<8x32xf32, #tpu.memory_space<vmem>>) attributes {dimension_semantics = [#tpu.dimension_semantics<parallel>], iteration_bounds = array<i64: 1>, scalar_prefetch = 0 : i64, scratch_operands = 0 : i64, tpu.core_type = #tpu.core_type<tc>, window_params = [{transform_indices = @transform_0, window_bounds = array<i64: 8, 32>}, {pipeline_mode = #tpu.pipeline_mode<synchronous>, transform_indices = @transform_1, window_bounds = array<i64: 32, 128>}, {pipeline_mode = #tpu.pipeline_mode<synchronous>, transform_indices = @transform_2, window_bounds = array<i64: 1, 128>}, {pipeline_mode = #tpu.pipeline_mode<synchronous>, transform_indices = @transform_3, window_bounds = array<i64: 128, 32>}, {pipeline_mode = #tpu.pipeline_mode<synchronous>, transform_indices = @transform_4, window_bounds = array<i64: 1, 32>}, {transform_indices = @transform_5, window_bounds = array<i64: 8, 32>}]} {
    %c0 = arith.constant 0 : index
    %c0_0 = arith.constant 0 : index
    %0 = vector.load %arg1[%c0, %c0_0] : memref<8x32xf32, #tpu.memory_space<vmem>>, vector<8x32xf32>
    %c0_1 = arith.constant 0 : index
    %c0_2 = arith.constant 0 : index
    %1 = vector.load %arg2[%c0_1, %c0_2] : memref<32x128xf32, #tpu.memory_space<vmem>>, vector<32x128xf32>
    %cst = arith.constant dense<0.000000e+00> : vector<8x128xf32>
    %2 = tpu.matmul %0, %1, %cst {dimension_numbers = #tpu.dot_dimension_numbers<[1], [0], [0], [1], [0, 0, 1, 1], [], []>} : vector<8x32xf32>, vector<32x128xf32>, vector<8x128xf32> -> vector<8x128xf32>
    %c0_3 = arith.constant 0 : index
    %c0_4 = arith.constant 0 : index
    %3 = vector.load %arg3[%c0_3, %c0_4] : memref<1x128xf32, #tpu.memory_space<vmem>>, vector<1x128xf32>
    %4 = vector.broadcast %3 : vector<1x128xf32> to vector<8x128xf32>
    %5 = arith.addf %2, %4 : vector<8x128xf32>
    %cst_5 = arith.constant 0.000000e+00 : f32
    %6 = vector.broadcast %cst_5 : f32 to vector<8x128xf32>
    %7 = arith.maximumf %5, %6 : vector<8x128xf32>
    %c0_6 = arith.constant 0 : index
    %c0_7 = arith.constant 0 : index
    %8 = vector.load %arg4[%c0_6, %c0_7] : memref<128x32xf32, #tpu.memory_space<vmem>>, vector<128x32xf32>
    %cst_8 = arith.constant dense<0.000000e+00> : vector<8x32xf32>
    %9 = tpu.matmul %7, %8, %cst_8 {dimension_numbers = #tpu.dot_dimension_numbers<[1], [0], [0], [1], [0, 0, 1, 1], [], []>} : vector<8x128xf32>, vector<128x32xf32>, vector<8x32xf32> -> vector<8x32xf32>
    %c0_9 = arith.constant 0 : index
    %c0_10 = arith.constant 0 : index
    %10 = vector.load %arg5[%c0_9, %c0_10] : memref<1x32xf32, #tpu.memory_space<vmem>>, vector<1x32xf32>
    %11 = vector.broadcast %10 : vector<1x32xf32> to vector<8x32xf32>
    %12 = arith.addf %9, %11 : vector<8x32xf32>
    %cst_11 = arith.constant 0.000000e+00 : f32
    %13 = vector.broadcast %cst_11 : f32 to vector<8x32xf32>
    %14 = arith.maximumf %12, %13 : vector<8x32xf32>
    %c0_12 = arith.constant 0 : index
    %c0_13 = arith.constant 0 : index
    %15 = vector.load %arg6[%c0_12, %c0_13] : memref<8x32xf32, #tpu.memory_space<vmem>>, vector<8x32xf32>
    tpu.vector_store %arg6[%c0_12, %c0_13], %14 {strides = array<i32>} : memref<8x32xf32, #tpu.memory_space<vmem>>, vector<8x32xf32>,
    return
  }
  func.func @transform_0(%arg0: i32) -> (i32, i32) {
    %c0_i32 = arith.constant 0 : i32
    %c0_i32_0 = arith.constant 0 : i32
    return %arg0, %c0_i32 : i32, i32
  }
  func.func @transform_1(%arg0: i32) -> (i32, i32) {
    %c0_i32 = arith.constant 0 : i32
    %c0_i32_0 = arith.constant 0 : i32
    %c0_i32_1 = arith.constant 0 : i32
    return %c0_i32, %c0_i32_0 : i32, i32
  }
  func.func @transform_2(%arg0: i32) -> (i32, i32) {
    %c0_i32 = arith.constant 0 : i32
    %c0_i32_0 = arith.constant 0 : i32
    %c0_i32_1 = arith.constant 0 : i32
    return %c0_i32, %c0_i32_0 : i32, i32
  }
  func.func @transform_3(%arg0: i32) -> (i32, i32) {
    %c0_i32 = arith.constant 0 : i32
    %c0_i32_0 = arith.constant 0 : i32
    %c0_i32_1 = arith.constant 0 : i32
    return %c0_i32, %c0_i32_0 : i32, i32
  }
  func.func @transform_4(%arg0: i32) -> (i32, i32) {
    %c0_i32 = arith.constant 0 : i32
    %c0_i32_0 = arith.constant 0 : i32
    %c0_i32_1 = arith.constant 0 : i32
    return %c0_i32, %c0_i32_0 : i32, i32
  }
  func.func @transform_5(%arg0: i32) -> (i32, i32) {
    %c0_i32 = arith.constant 0 : i32
    %c0_i32_0 = arith.constant 0 : i32
    return %arg0, %c0_i32 : i32, i32
  }
}

</mosaic_0001>

<bundles_post_ra>
// kernel: tpu_custom_call.1
= control target key start
LH: loop header
LB: loop body
LE: loop exit
PB: predicated region body
PF: predicated region fallthrough
CT: control target
= control target key end

     0   :  { %v346_v3 = vmov 0.0|0.0   ;;  %vm347_vm0 = vmmov 0   ;;  %v348_v6 = vmov 0.0   ;;  %s463_s0 = inlined_call_operand.vmem [shape: f32[8,32], index: 0, kind: input, shape index: {}]   ;;  %s464_s1 = inlined_call_operand.vmem [shape: f32[32,128], index: 1, kind: input, shape index: {}]   ;;  %s465_s2 = inlined_call_operand.vmem [shape: f32[1,128], index: 2, kind: input, shape index: {}]   ;;  %s466_s3 = inlined_call_operand.vmem [shape: f32[128,32], index: 3, kind: input, shape index: {}]   ;;  %s467_s4 = inlined_call_operand.vmem [shape: f32[1,32], index: 4, kind: input, shape index: {}]   ;;  %s468_s5 = inlined_call_operand.hbm [shape: f32[8,32], index: 5, kind: output, shape index: {}]  }
   0x1   :  { %v22_v0 = vld [vmem:[%s464_s1] sm:$0xff]  ;;  %v23_v1 = vld [vmem:[%s464_s1 + $0x8] sm:$0xff]  ;;  %v24_v2 = vld [vmem:[%s464_s1 + $0x10] sm:$0xff]  ;;  %288 = vmatprep.subr.bf16.mxu0 %v346_v3  ;;  %250 = vmatprep.mubr.msk.f32.mxu0 %vm347_vm0, %v348_v6 }
   0x2   :  { %v289_v4 = vpack.c.bf16 %v23_v1, %v22_v0  ;;  %v25_v5 = vld [vmem:[%s464_s1 + $0x18] sm:$0xff]  ;;  %v108_v7 = vld [vmem:[%s466_s3] sm:$0xff]  ;;  %294 = vmatprep.subr.bf16.mxu1 %v346_v3  ;;  %v109_v8 = vld [vmem:[%s466_s3 + $0x8] sm:$0xff]  ;;  %285 = vmatprep.mubr.msk.f32.mxu1 %vm347_vm0, %v348_v6 }
   0x3   :  { %v110_v9 = vld [vmem:[%s466_s3 + $0x10] sm:$0xff]  ;;  %v111_v10 = vld [vmem:[%s466_s3 + $0x18] sm:$0xff]  ;;  %v292_v11 = vpack.c.bf16 %v25_v5, %v24_v2  ;;  %v295_v12 = vpack.c.bf16 %v109_v8, %v108_v7  ;;  %v112_v14 = vld [vmem:[%s466_s3 + $0x20] sm:$0xff] }
   0x4   :  { %290 = vmatpush3.bf16.msra.mxu0 %v289_v4  ;;  %v298_v13 = vpack.c.bf16 %v111_v10, %v110_v9  ;;  %v113_v15 = vld [vmem:[%s466_s3 + $0x28] sm:$0xff] }
   0x5   :  { %291 = vmatprep.subr.bf16.mxu0 %v346_v3  ;;  %296 = vmatpush3.bf16.msra.mxu1 %v295_v12 }
   0x6   :  { %297 = vmatprep.subr.bf16.mxu1 %v346_v3 }
   0x7   :  { %10 = vsyncpa [#allocation3], 0  ;;  %v21_v16 = vld [vmem:[%s463_s0] sm:$0xff]  ;;  %vm33_vm1 = vcmask 261120   ;;  %v301_v17 = vpack.c.bf16 %v113_v15, %v112_v14  ;;  %v114_v18 = vld [vmem:[%s466_s3 + $0x30] sm:$0xff]  ;;  %s349_s11 = smov [#allocation2]  }
   0x8   :  { %293 = vmatpush3.bf16.msra.mxu0 %v292_v11  ;;  %v115_v19 = vld [vmem:[%s466_s3 + $0x38] sm:$0xff]  ;;  %v116_v21 = vld [vmem:[%s466_s3 + $0x40] sm:$0xff]  ;;  %v117_v22 = vld [vmem:[%s466_s3 + $0x48] sm:$0xff]  ;;  %s209_s12 = sshll.u32 %s349_s11, 4  ;;  %s210_s12 = int_to_ptr.vmem [resolvable:$true] %s209_s12 }
   0x9   :  { %299 = vmatpush3.bf16.msra.mxu1 %v298_v13  ;;  %v304_v20 = vpack.c.bf16 %v115_v19, %v114_v18  ;;  %v307_v23 = vpack.c.bf16 %v117_v22, %v116_v21  ;;  %v118_v24 = vld [vmem:[%s466_s3 + $0x50] sm:$0xff]  ;;  %v119_v25 = vld [vmem:[%s466_s3 + $0x58] sm:$0xff]  ;;  %v120_v27 = vld [vmem:[%s466_s3 + $0x60] sm:$0xff]  ;;  %p327_p1 = scmp.lt.s32.totalorder %s210_s12, %s210_s12 }
   0xa   :  { %300 = vmatprep.subr.bf16.mxu1 %v346_v3  ;;  %v310_v26 = vpack.c.bf16 %v119_v25, %v118_v24  ;;  %v121_v28 = vld [vmem:[%s466_s3 + $0x68] sm:$0xff]  ;;  %v122_v30 = vld [vmem:[%s466_s3 + $0x70] sm:$0xff]  ;;  %v123_v31 = vld [vmem:[%s466_s3 + $0x78] sm:$0xff]  ;;  %s322_s3 = scalar_lea.vmem %s210_s12, 128 }
   0xb   :  { %251 = vmatmul.mubr.msk.f32.vlgmr.msra.gmra.mrb[0].mxu0 %vm33_vm1, %v21_v16  ;;  %v313_v29 = vpack.c.bf16 %v121_v28, %v120_v27  ;;  %v316_v32 = vpack.c.bf16 %v123_v31, %v122_v30  ;;  %v217_v33 = vld [vmem:[%s465_s2] ss:$0 sm:$0xff]  ;;  %p323_p0 = scmp.ne.s32.totalorder %s210_s12, %s322_s3  ;;  %p328_p2 = scmp.lt.s32.totalorder %s322_s3, %s322_s3 }
   0xc   :  { %v219_v38 = vld [vmem:[%s467_s4] ss:$0 sm:$0xff] }
   0xd   :  { %302 = vmatpush3.bf16.msra.mxu1 %v301_v17  ;;  %p329_p3 = por %p328_p2, %p327_p1 }
   0xe   :  { %303 = vmatprep.subr.bf16.mxu1 %v346_v3 }
   0xf   :  { %p330_p4 = pnand %p329_p3, %p323_p0 }
  0x11   :  { %305 = vmatpush3.bf16.msra.mxu1 %v304_v20 }
  0x12   :  { %306 = vmatprep.subr.bf16.mxu1 %v346_v3 }
  0x15   :  { %308 = vmatpush3.bf16.msra.mxu1 %v307_v23 }
  0x16   :  { %309 = vmatprep.subr.bf16.mxu1 %v346_v3 }
  0x19   :  { %311 = vmatpush3.bf16.msra.mxu1 %v310_v26 }
  0x1a   :  { %312 = vmatprep.subr.bf16.mxu1 %v346_v3 }
  0x1d   :  { %314 = vmatpush3.bf16.msra.mxu1 %v313_v29 }
  0x1e   :  { %315 = vmatprep.subr.bf16.mxu1 %v346_v3 }
  0x21   :  { %317 = vmatpush3.bf16.msra.mxu1 %v316_v32 }
  0xde   :  { %v103_v34 = vpop.f32.mrb[0].mxu0 }
  0xdf   :  { %v104_v35 = vadd.f32 %v217_v33, %v103_v34  ;;  %v252_v36 = vpop.f32.mrb[1].mxu0 }
  0xe1   :  { %v107_v37 = vmax.f32 %v104_v35, 0.0 }
  0xe3   :  { %286 = vmatmul.mubr.f32.vlgmr.msra.gmra.mrb[0].mxu1 %v107_v37 }
 0x1b6   :  { %v197_v39 = vpop.f32.mrb[0].mxu1 }
 0x1b7   :  { %v198_v40 = vadd.f32 %v219_v38, %v197_v39  ;;  %v287_v41 = vpop.f32.mrb[1].mxu1 }
 0x1b9   :  { %v201_v42 = vmax.f32 %v198_v40, 0.0 }
 0x1bb   :  { %202 = vst.msk [vmem:[#allocation2] sm:$0xff] %vm33_vm1, %v201_v42 }
 0x1bc   :  { %333 = shalt.err (!%p330_p4)
}
 0x1bd   :  { %s334_s4 = scalar_lea.hbm %s468_s5, 128 }
 0x1be   :  { %p335_p5 = scmp.ne.s32.totalorder %s468_s5, %s334_s4  ;;  %p338_p6 = scmp.lt.u32.totalorder %s334_s4, %s468_s5 }
 0x1c0   :  { %p340_p7 = pnand %p338_p6, %p335_p5 }
 0x1c2   :  { %343 = shalt.err (!%p340_p7)
}
 0x1c3   :  { %212 = dma.vmem_to_hbm [thread:$0]  %s210_s12, 128, %s468_s5, [#allocation3]  }
 0x1c4   :  { %344 = dma.done.wait [#allocation3], 128  }
 0x1c5   :  { %345 = vsyncadd [#allocation3], 4294967168 }
 0x1c6   :  { %216 = vsyncpa [#allocation3], 1 }

</bundles_post_ra>
